<compile_context>
chip_gen: v5e
topology: v5e:2x2
jax: 0.10.0
libtpu: 0.0.40
codegen_flags: <defaults>
</compile_context>

<pallas_src>
import numpy as np
import jax
import jax.numpy as jnp
from jax.experimental import pallas as pl
from jax.experimental.pallas import tpu as pltpu

LANE = 128
SUBLANE_BYTES = 32                    # 8/16/32 rows for 4/2/1-byte dtypes
MAX_DMA_CHUNKS = 4                    # outstanding HBM->HBM DMAs
SMALL_COPY_BYTES = 4 * 1024 * 1024    # below this the pallas_call fixed cost dominates


def _resolve_shape(total, shape):
    """Resolve a torch-style view shape (supports a single -1). Raises on mismatch."""
    shape = [int(s) for s in shape]
    if shape.count(-1) > 1:
        raise ValueError(f"only one dimension may be -1, got {shape}")
    if -1 in shape:
        idx = shape.index(-1)
        known = 1
        for i, s in enumerate(shape):
            if i != idx:
                known *= s
        if known == 0 or total % known != 0:
            raise ValueError(f"cannot infer -1 dim: {total} elements into {shape}")
        shape[idx] = total // known
    if int(np.prod(shape)) != total:
        raise ValueError(f"view shape {shape} does not match {total} elements")
    return tuple(shape)


def _chunk_bounds(rows, sub, max_chunks=MAX_DMA_CHUNKS):
    """Split [0, rows) into <= max_chunks contiguous (start, size) chunks whose
    start offsets are multiples of `sub` (keeps HBM DMA descriptors on tile
    boundaries).  The last chunk absorbs any remainder.  All values static."""
    if rows <= sub:
        return [(0, rows)]
    n = int(min(max_chunks, max(1, rows // sub)))
    base = max(sub, ((rows // n) // sub) * sub)
    bounds = []
    start = 0
    while len(bounds) < n - 1 and start + base < rows:
        bounds.append((start, base))
        start += base
    bounds.append((start, rows - start))
    return bounds


def _make_hbm_copy_kernel(bounds):
    """Kernel copying a (rows, 128) HBM array to an HBM output with a few
    simultaneously outstanding DMAs.  No VMEM staging, no vector ops."""

    def kernel(x_hbm, o_hbm, sems):
        copies = [
            pltpu.make_async_copy(
                x_hbm.at[pl.ds(start, size), :],
                o_hbm.at[pl.ds(start, size), :],
                sems.at[c],
            )
            for c, (start, size) in enumerate(bounds)
        ]
        for cp in copies:          # issue all chunks: 2-4 DMAs in flight at once
            cp.start()
        for cp in copies:          # then drain
            cp.wait()

    return kernel


def _pallas_view_copy(x, target, min_pallas_bytes=SMALL_COPY_BYTES):
    """Materialized copy of x, then metadata reshape to `target`."""
    total = int(np.prod(x.shape))
    itemsize = int(jnp.dtype(x.dtype).itemsize)
    nbytes = total * itemsize

    # Small or non-lane-aligned inputs: a real XLA copy (NOT a metadata-only
    # view -- materialize=True must always return fresh storage).
    if total == 0 or total % LANE != 0 or nbytes < min_pallas_bytes:
        return jnp.array(x, copy=True).reshape(target)

    rows = total // LANE
    flat2d = x.reshape(rows, LANE)

    # dtype-aware sublane multiple for chunk boundaries.
    sub = max(8, SUBLANE_BYTES // max(itemsize, 1))
    bounds = _chunk_bounds(rows, sub)

    out2d = pl.pallas_call(
        _make_hbm_copy_kernel(bounds),
        out_shape=jax.ShapeDtypeStruct((rows, LANE), flat2d.dtype),
        in_specs=[pl.BlockSpec(memory_space=pl.ANY)],   # raw HBM ref, no auto-DMA
        out_specs=pl.BlockSpec(memory_space=pl.ANY),
        scratch_shapes=[pltpu.SemaphoreType.DMA((len(bounds),))],
        cost_estimate=pl.CostEstimate(
            flops=0, transcendentals=0, bytes_accessed=2 * nbytes
        ),
    )(flat2d)

    return out2d.reshape(target)


class View:
    """JAX/Pallas equivalent of the PyTorch View module.

    Default path is a metadata-only reshape (exactly what torch .view is for a
    contiguous tensor).  materialize=True forces a real copy: lane-aligned
    inputs above `min_pallas_bytes` use the Pallas HBM->HBM DMA kernel, all
    other shapes use an XLA copy.
    """

    def __init__(self, shape, materialize=False, min_pallas_bytes=SMALL_COPY_BYTES):
        self.shape = tuple(shape)
        self.materialize = materialize
        self.min_pallas_bytes = int(min_pallas_bytes)

    def __call__(self, x, shape=None):
        target = self.shape if shape is None else tuple(shape)
        total = int(np.prod(x.shape))
        target = _resolve_shape(total, target)

        if not self.materialize:
            # Pure view: metadata-only, zero HBM traffic.
            return x.reshape(target)

        return _pallas_view_copy(x, target, self.min_pallas_bytes)


if __name__ == "__main__":
    key = jax.random.PRNGKey(0)
    k0, k1 = jax.random.split(key)

    # NCHW input, as a PyTorch conv feature map would be.
    x = jax.random.normal(k0, (2, 4, 16, 16), dtype=jnp.float32)
    ref = np.asarray(x)

    # 1) Default (fast) path: metadata-only view, flatten all but batch dim.
    view = View((2, -1))
    y = jax.block_until_ready(view(x))
    assert y.shape == (2, 4 * 16 * 16) and y.dtype == x.dtype
    np.testing.assert_array_equal(np.asarray(y), ref.reshape(2, -1))

    # Dynamic-shape path (forward(x, shape=...)).
    y2 = jax.block_until_ready(view(x, shape=(8, 16, 16)))
    np.testing.assert_array_equal(np.asarray(y2), ref.reshape(8, 16, 16))

    # 2) Materialized path on the small input: exercise the Pallas HBM->HBM DMA
    #    kernel (min_pallas_bytes=0 disables the small-input XLA fallback).
    view_copy = View((2, -1), materialize=True, min_pallas_bytes=0)
    y3 = jax.block_until_ready(view_copy(x))
    assert y3.shape == (2, 4 * 16 * 16) and y3.dtype == x.dtype
    np.testing.assert_array_equal(np.asarray(y3), ref.reshape(2, -1))

    y4 = jax.block_until_ready(view_copy(x, shape=(8, 16, 16)))
    np.testing.assert_array_equal(np.asarray(y4), ref.reshape(8, 16, 16))

    # 3) bf16 case with multiple outstanding DMA chunks (4 x 512 rows).
    xb = jax.random.normal(k1, (8, 256, 128), dtype=jnp.bfloat16)
    yb = jax.block_until_ready(
        View((-1, 128), materialize=True, min_pallas_bytes=0)(xb)
    )
    assert yb.shape == (8 * 256, 128) and yb.dtype == xb.dtype
    np.testing.assert_array_equal(np.asarray(yb), np.asarray(xb).reshape(-1, 128))

    # 4) Non-lane-aligned materialized copy: XLA-copy fallback (still a real copy).
    xs = jax.random.normal(k0, (3, 5, 7), dtype=jnp.float32)
    ys = jax.block_until_ready(View((105,), materialize=True)(xs))
    np.testing.assert_array_equal(np.asarray(ys), np.asarray(xs).reshape(105))

    print("KERNEL_OK")
</pallas_src>

<mosaic_0001>
module attributes {stable_mosaic.version = 11 : i64} {
  func.func @kernel(%arg0: memref<16x128xf32, #tpu.memory_space<any>>, %arg1: memref<16x128xf32, #tpu.memory_space<any>>, %arg2: memref<2x!tpu.dma_semaphore, #tpu.memory_space<semaphore_mem>>) attributes {dimension_semantics = [], scalar_prefetch = 0 : i64, scratch_operands = 1 : i64, tpu.core_type = #tpu.core_type<tc>} {
    %c0_i32 = arith.constant 0 : i32
    %c0_i32_0 = arith.constant 0 : i32
    %c0_i32_1 = arith.constant 0 : i32
    %0 = tpu.memref_slice %arg0[%c0_i32_0, %c0_i32_1] : memref<16x128xf32, #tpu.memory_space<any>> -> memref<8x128xf32, #tpu.memory_space<any>>
    %c0_i32_2 = arith.constant 0 : i32
    %c0_i32_3 = arith.constant 0 : i32
    %1 = tpu.memref_slice %arg1[%c0_i32_2, %c0_i32_3] : memref<16x128xf32, #tpu.memory_space<any>> -> memref<8x128xf32, #tpu.memory_space<any>>
    %2 = tpu.memref_slice %arg2[%c0_i32] : memref<2x!tpu.dma_semaphore, #tpu.memory_space<semaphore_mem>> -> memref<1x!tpu.dma_semaphore, #tpu.memory_space<semaphore_mem>>
    %3 = tpu.memref_squeeze %2 : memref<1x!tpu.dma_semaphore, #tpu.memory_space<semaphore_mem>> -> memref<!tpu.dma_semaphore, #tpu.memory_space<semaphore_mem>>
    tpu.enqueue_dma source(%0 : memref<8x128xf32, #tpu.memory_space<any>>) target(%1 : memref<8x128xf32, #tpu.memory_space<any>>) target_semaphore(%3 : memref<!tpu.dma_semaphore, #tpu.memory_space<semaphore_mem>>)
    %c1_i32 = arith.constant 1 : i32
    %c8_i32 = arith.constant 8 : i32
    %c0_i32_4 = arith.constant 0 : i32
    %4 = tpu.memref_slice %arg0[%c8_i32, %c0_i32_4] : memref<16x128xf32, #tpu.memory_space<any>> -> memref<8x128xf32, #tpu.memory_space<any>>
    %c8_i32_5 = arith.constant 8 : i32
    %c0_i32_6 = arith.constant 0 : i32
    %5 = tpu.memref_slice %arg1[%c8_i32_5, %c0_i32_6] : memref<16x128xf32, #tpu.memory_space<any>> -> memref<8x128xf32, #tpu.memory_space<any>>
    %6 = tpu.memref_slice %arg2[%c1_i32] : memref<2x!tpu.dma_semaphore, #tpu.memory_space<semaphore_mem>> -> memref<1x!tpu.dma_semaphore, #tpu.memory_space<semaphore_mem>>
    %7 = tpu.memref_squeeze %6 : memref<1x!tpu.dma_semaphore, #tpu.memory_space<semaphore_mem>> -> memref<!tpu.dma_semaphore, #tpu.memory_space<semaphore_mem>>
    tpu.enqueue_dma source(%4 : memref<8x128xf32, #tpu.memory_space<any>>) target(%5 : memref<8x128xf32, #tpu.memory_space<any>>) target_semaphore(%7 : memref<!tpu.dma_semaphore, #tpu.memory_space<semaphore_mem>>)
    %c0_i32_7 = arith.constant 0 : i32
    %c0_i32_8 = arith.constant 0 : i32
    %c0_i32_9 = arith.constant 0 : i32
    %8 = tpu.memref_slice %arg0[%c0_i32_8, %c0_i32_9] : memref<16x128xf32, #tpu.memory_space<any>> -> memref<8x128xf32, #tpu.memory_space<any>>
    %c0_i32_10 = arith.constant 0 : i32
    %c0_i32_11 = arith.constant 0 : i32
    %9 = tpu.memref_slice %arg1[%c0_i32_10, %c0_i32_11] : memref<16x128xf32, #tpu.memory_space<any>> -> memref<8x128xf32, #tpu.memory_space<any>>
    %10 = tpu.memref_slice %arg2[%c0_i32_7] : memref<2x!tpu.dma_semaphore, #tpu.memory_space<semaphore_mem>> -> memref<1x!tpu.dma_semaphore, #tpu.memory_space<semaphore_mem>>
    %11 = tpu.memref_squeeze %10 : memref<1x!tpu.dma_semaphore, #tpu.memory_space<semaphore_mem>> -> memref<!tpu.dma_semaphore, #tpu.memory_space<semaphore_mem>>
    tpu.wait_dma2 semaphore(%11 : memref<!tpu.dma_semaphore, #tpu.memory_space<semaphore_mem>>) src(%8 : memref<8x128xf32, #tpu.memory_space<any>>) dst(%9 : memref<8x128xf32, #tpu.memory_space<any>>)
    %c1_i32_12 = arith.constant 1 : i32
    %c8_i32_13 = arith.constant 8 : i32
    %c0_i32_14 = arith.constant 0 : i32
    %12 = tpu.memref_slice %arg0[%c8_i32_13, %c0_i32_14] : memref<16x128xf32, #tpu.memory_space<any>> -> memref<8x128xf32, #tpu.memory_space<any>>
    %c8_i32_15 = arith.constant 8 : i32
    %c0_i32_16 = arith.constant 0 : i32
    %13 = tpu.memref_slice %arg1[%c8_i32_15, %c0_i32_16] : memref<16x128xf32, #tpu.memory_space<any>> -> memref<8x128xf32, #tpu.memory_space<any>>
    %14 = tpu.memref_slice %arg2[%c1_i32_12] : memref<2x!tpu.dma_semaphore, #tpu.memory_space<semaphore_mem>> -> memref<1x!tpu.dma_semaphore, #tpu.memory_space<semaphore_mem>>
    %15 = tpu.memref_squeeze %14 : memref<1x!tpu.dma_semaphore, #tpu.memory_space<semaphore_mem>> -> memref<!tpu.dma_semaphore, #tpu.memory_space<semaphore_mem>>
    tpu.wait_dma2 semaphore(%15 : memref<!tpu.dma_semaphore, #tpu.memory_space<semaphore_mem>>) src(%12 : memref<8x128xf32, #tpu.memory_space<any>>) dst(%13 : memref<8x128xf32, #tpu.memory_space<any>>)
    return
  }
}

</mosaic_0001>

<bundles_post_ra>
// kernel: tpu_custom_call.1
= control target key start
LH: loop header
LB: loop body
LE: loop exit
PB: predicated region body
PF: predicated region fallthrough
CT: control target
= control target key end

     0   :  { %s60_s15 = smov [#allocation2]   ;;  %s61_s16 = smov [#allocation3]   ;;  %s87_s0 = inlined_call_operand.hbm [shape: f32[16,128], index: 0, kind: input, shape index: {}]   ;;  %s88_s1 = inlined_call_operand.hbm [shape: f32[16,128], index: 1, kind: output, shape index: {}]  }
   0x1   :  { %s10_s8 = sshll.u32 %s87_s0, 4  ;;  %s12_s11 = sshll.u32 %s88_s1, 4  ;;  %s11_s8 = int_to_ptr.hbm [resolvable:$true] %s10_s8  ;;  %s13_s11 = int_to_ptr.hbm [resolvable:$true] %s12_s11 }
   0x2   :  { %s17_s14 = scalar_lea.hbm %s87_s0, 8  ;;  %s62_s17 = smov 0  }
   0x3   :  { %16 = dma.general %s11_s8, 128, %s13_s11, %s60_s15, %s61_s16, [#allocation4], %s62_s17, 0  }
   0x4   :  { %s18_s20 = scalar_lea.hbm %s88_s1, 8  ;;  %s24_s21 = sshll.u32 %s17_s14, 4  ;;  %s25_s21 = int_to_ptr.hbm [resolvable:$true] %s24_s21 }
   0x5   :  { %s26_s22 = sshll.u32 %s18_s20, 4  ;;  %s63_s23 = smov [#allocation2 + $0x1]   ;;  %s27_s22 = int_to_ptr.hbm [resolvable:$true] %s26_s22 }
   0x6   :  { %s64_s24 = smov [#allocation5]  }
   0x7   :  { %30 = dma.general %s25_s21, 128, %s27_s22, %s63_s23, %s64_s24, [#allocation6], %s62_s17, 0  }
   0x8   :  { %56 = dma.done.wait [#allocation2], 128 }
   0x9   :  { %57 = vsyncadd [#allocation2], 4294967168 }
   0xa   :  { %58 = dma.done.wait [#allocation2 + $0x1], 128 }
   0xb   :  { %59 = vsyncadd [#allocation2 + $0x1], 4294967168 }
   0xc   :  { %36 = vsyncmov [#allocation2] }
   0xf   :  { %s37_s0 = vpop.sfrf %36 }
  0x10   :  { %p49_p0 = scmp.ne.s32.totalorder %s37_s0, 0 }
  0x12   :  { %41 = shalt.err (%p49_p0)  }
  0x13   :  { %43 = vsyncmov [#allocation2 + $0x1] }
  0x16   :  { %s44_s25 = vpop.sfrf %43 }
  0x17   :  { %p50_p1 = scmp.ne.s32.totalorder %s44_s25, 0 }
  0x19   :  { %48 = shalt.err (%p50_p1)  }

</bundles_post_ra>
